<compile_context>
chip_gen: v7x
topology: tpu7x:2x2x1
jax: 0.10.0
libtpu: 0.0.40
codegen_flags: <defaults>
</compile_context>

<pallas_src>
import jax
import jax.numpy as jnp
from jax.experimental import pallas as pl
from jax.experimental.pallas import tpu as pltpu


def _embeddings_kernel(p_ref, w_ref, pos_ref, o_ref):
    """Grid = (B,): one batch element per step.

    p_ref:   (1, N+1, K+2)  augmented patch matrix for this batch element
    w_ref:   (K+2, D)       rows = [cls_token; conv_bias; W_flat]
    pos_ref: (1, N+1, D)    position embeddings (shared across batch)
    o_ref:   (1, N+1, D)    output embeddings
    """
    proj = jnp.dot(p_ref[0], w_ref[...], preferred_element_type=jnp.float32)
    o_ref[0] = (proj + pos_ref[0]).astype(o_ref.dtype)


def vit_embeddings(x, conv_w, conv_b, cls_token, pos_emb, *, patch_size):
    """x: (B, C, H, W) float32. Returns (B, num_patches + 1, hidden_size)."""
    B, C, H, W = x.shape
    P = patch_size
    nh, nw = H // P, W // P
    N = nh * nw
    D = conv_w.shape[0]
    K = C * P * P
    dt = x.dtype

    # ---- wrapper-side layout plumbing (negligible FLOPs) -------------------
    # im2col for a stride==kernel non-overlapping conv: (B, N, C*P*P),
    # flattened over (c, i, j) to match Conv2d's (O, C, P, P) weight layout.
    patches = x.reshape(B, C, nh, P, nw, P)
    patches = patches.transpose(0, 2, 4, 1, 3, 5).reshape(B, N, K)

    # Homogeneous augmentation: fold cls token + conv bias into the matmul.
    col_cls = jnp.zeros((B, N + 1, 1), dt).at[:, 0, 0].set(1.0)   # selects cls row
    col_one = jnp.ones((B, N + 1, 1), dt).at[:, 0, 0].set(0.0)    # selects bias
    patches_pad = jnp.concatenate([jnp.zeros((B, 1, K), dt), patches], axis=1)
    p_aug = jnp.concatenate([col_cls, col_one, patches_pad], axis=-1)  # (B, N+1, K+2)

    w_flat = conv_w.reshape(D, K).T                                    # (K, D)
    w_aug = jnp.concatenate(
        [cls_token.reshape(1, D), conv_b.reshape(1, D), w_flat], axis=0)  # (K+2, D)

    return pl.pallas_call(
        _embeddings_kernel,
        out_shape=jax.ShapeDtypeStruct((B, N + 1, D), dt),
        grid_spec=pltpu.PrefetchScalarGridSpec(
            num_scalar_prefetch=0,
            grid=(B,),
            in_specs=[
                pl.BlockSpec((1, N + 1, K + 2), lambda b: (b, 0, 0)),   # p_aug
                pl.BlockSpec((K + 2, D), lambda b: (0, 0)),             # w_aug
                pl.BlockSpec((1, N + 1, D), lambda b: (0, 0, 0)),       # pos_emb
            ],
            out_specs=pl.BlockSpec((1, N + 1, D), lambda b: (b, 0, 0)),
        ),
        compiler_params=pltpu.CompilerParams(
            dimension_semantics=("parallel",)),
    )(p_aug, w_aug, pos_emb)


def vit_embeddings_ref(x, conv_w, conv_b, cls_token, pos_emb, *, patch_size):
    """Pure-JAX reference mirroring the PyTorch forward (dropout = identity)."""
    P = patch_size
    y = jax.lax.conv_general_dilated(
        x, conv_w, window_strides=(P, P), padding="VALID",
        dimension_numbers=("NCHW", "OIHW", "NCHW"),
        precision=jax.lax.Precision.HIGHEST)
    y = y + conv_b[None, :, None, None]
    B, D, nh, nw = y.shape
    y = y.reshape(B, D, nh * nw).transpose(0, 2, 1)                 # (B, N, D)
    cls = jnp.broadcast_to(cls_token.reshape(1, 1, D), (B, 1, D))
    y = jnp.concatenate([cls, y], axis=1)                            # (B, N+1, D)
    return y + pos_emb


if __name__ == "__main__":
    # Small shapes consistent with the module.
    B, C, IMG, P = 2, 4, 16, 4
    D = 32                                # hidden_size
    N = (IMG // P) ** 2                   # num_patches = 16, seq = 17

    key = jax.random.PRNGKey(0)
    k = jax.random.split(key, 5)

    x = jax.random.normal(k[0], (B, C, IMG, IMG), dtype=jnp.float32)
    conv_w = 0.05 * jax.random.normal(k[1], (D, C, P, P), dtype=jnp.float32)
    conv_b = 0.05 * jax.random.normal(k[2], (D,), dtype=jnp.float32)
    cls_token = jax.random.normal(k[3], (1, 1, D), dtype=jnp.float32)
    pos_emb = jax.random.normal(k[4], (1, N + 1, D), dtype=jnp.float32)

    out = vit_embeddings(x, conv_w, conv_b, cls_token, pos_emb, patch_size=P)
    out = jax.block_until_ready(out)

    ref = vit_embeddings_ref(x, conv_w, conv_b, cls_token, pos_emb, patch_size=P)
    assert out.shape == (B, N + 1, D)
    assert jnp.allclose(out, ref, atol=5e-4, rtol=5e-4), (
        float(jnp.max(jnp.abs(out - ref))))

    print("KERNEL_OK")
</pallas_src>

<mosaic_0001>
module attributes {stable_mosaic.version = 11 : i64} {
  func.func @_embeddings_kernel(%arg0: i32, %arg1: memref<1x17x66xf32, #tpu.memory_space<vmem>>, %arg2: memref<66x32xf32, #tpu.memory_space<vmem>>, %arg3: memref<1x17x32xf32, #tpu.memory_space<vmem>>, %arg4: memref<1x17x32xf32, #tpu.memory_space<vmem>>) attributes {dimension_semantics = [#tpu.dimension_semantics<parallel>], iteration_bounds = array<i64: 2>, scalar_prefetch = 0 : i64, scratch_operands = 0 : i64, tpu.core_type = #tpu.core_type<tc>, window_params = [{transform_indices = @transform_0, window_bounds = array<i64: 1, 17, 66>}, {pipeline_mode = #tpu.pipeline_mode<synchronous>, transform_indices = @transform_1, window_bounds = array<i64: 66, 32>}, {pipeline_mode = #tpu.pipeline_mode<synchronous>, transform_indices = @transform_2, window_bounds = array<i64: 1, 17, 32>}, {transform_indices = @transform_3, window_bounds = array<i64: 1, 17, 32>}]} {
    %c0 = arith.constant 0 : index
    %c0_0 = arith.constant 0 : index
    %c0_1 = arith.constant 0 : index
    %0 = vector.load %arg1[%c0, %c0_0, %c0_1] : memref<1x17x66xf32, #tpu.memory_space<vmem>>, vector<1x17x66xf32>
    %1 = vector.shape_cast %0 : vector<1x17x66xf32> to vector<17x66xf32>
    %c0_2 = arith.constant 0 : index
    %c0_3 = arith.constant 0 : index
    %2 = vector.load %arg2[%c0_2, %c0_3] : memref<66x32xf32, #tpu.memory_space<vmem>>, vector<66x32xf32>
    %cst = arith.constant dense<0.000000e+00> : vector<17x32xf32>
    %3 = tpu.matmul %1, %2, %cst {dimension_numbers = #tpu.dot_dimension_numbers<[1], [0], [0], [1], [0, 0, 1, 1], [], []>} : vector<17x66xf32>, vector<66x32xf32>, vector<17x32xf32> -> vector<17x32xf32>
    %c0_4 = arith.constant 0 : index
    %c0_5 = arith.constant 0 : index
    %c0_6 = arith.constant 0 : index
    %4 = vector.load %arg3[%c0_4, %c0_5, %c0_6] : memref<1x17x32xf32, #tpu.memory_space<vmem>>, vector<1x17x32xf32>
    %5 = vector.shape_cast %4 : vector<1x17x32xf32> to vector<17x32xf32>
    %6 = arith.addf %3, %5 : vector<17x32xf32>
    %c0_7 = arith.constant 0 : index
    %c0_8 = arith.constant 0 : index
    %c0_9 = arith.constant 0 : index
    %7 = vector.load %arg4[%c0_7, %c0_8, %c0_9] : memref<1x17x32xf32, #tpu.memory_space<vmem>>, vector<1x17x32xf32>
    %8 = vector.shape_cast %7 : vector<1x17x32xf32> to vector<17x32xf32>
    %9 = vector.shape_cast %6 : vector<17x32xf32> to vector<1x17x32xf32>
    tpu.vector_store %arg4[%c0_7, %c0_8, %c0_9], %9 {strides = array<i32>} : memref<1x17x32xf32, #tpu.memory_space<vmem>>, vector<1x17x32xf32>,
    return
  }
  func.func @transform_0(%arg0: i32) -> (i32, i32, i32) {
    %c0_i32 = arith.constant 0 : i32
    %c0_i32_0 = arith.constant 0 : i32
    %c0_i32_1 = arith.constant 0 : i32
    return %arg0, %c0_i32, %c0_i32_0 : i32, i32, i32
  }
  func.func @transform_1(%arg0: i32) -> (i32, i32) {
    %c0_i32 = arith.constant 0 : i32
    %c0_i32_0 = arith.constant 0 : i32
    %c0_i32_1 = arith.constant 0 : i32
    return %c0_i32, %c0_i32_0 : i32, i32
  }
  func.func @transform_2(%arg0: i32) -> (i32, i32, i32) {
    %c0_i32 = arith.constant 0 : i32
    %c0_i32_0 = arith.constant 0 : i32
    %c0_i32_1 = arith.constant 0 : i32
    %c0_i32_2 = arith.constant 0 : i32
    return %c0_i32, %c0_i32_0, %c0_i32_1 : i32, i32, i32
  }
  func.func @transform_3(%arg0: i32) -> (i32, i32, i32) {
    %c0_i32 = arith.constant 0 : i32
    %c0_i32_0 = arith.constant 0 : i32
    %c0_i32_1 = arith.constant 0 : i32
    return %arg0, %c0_i32, %c0_i32_0 : i32, i32, i32
  }
}

</mosaic_0001>

<bundles_post_ra>
// kernel: tpu_custom_call.1
= control target key start
LH: loop header
LB: loop body
LE: loop exit
PB: predicated region body
PF: predicated region fallthrough
CT: control target
= control target key end

     0   :  { %s457_s12 = smov 0   ;;  %s516_s0 = inlined_call_operand.vmem [shape: f32[2,17,66], index: 0, kind: input, shape index: {}]   ;;  %s517_s1 = inlined_call_operand.vmem [shape: f32[66,32], index: 1, kind: input, shape index: {}]   ;;  %s518_s2 = inlined_call_operand.vmem [shape: f32[1,17,32], index: 2, kind: input, shape index: {}]   ;;  %s519_s3 = inlined_call_operand.vmem [shape: f32[2,17,32], index: 3, kind: output, shape index: {}]  }
   0x1 LB: > { %s340_s13 = sadd.s32 4294967295, %s432_s12   ;;  %p344_p0 = scmp.ge.s32.totalorder %s432_s12, 1  ;;  %s432_s12 = sphi %s457_s12, %s13_s12  }
   0x2   : > { %p137_p1 = scmp.lt.s32.totalorder %s432_s12, 3 }
   0x4   : > { %p138_p2 = pnand %p344_p0, %p137_p1 }
   0x5   : > { %v174_v0 = vld [vmem:[%s517_s1] sm:$0xff] (!%p138_p2)  ;;  %v175_v1 = vld [vmem:[%s517_s1 + $0x8] sm:$0xff] (!%p138_p2)  ;;  %v176_v2 = vld [vmem:[%s517_s1 + $0x10] sm:$0xff] (!%p138_p2)  ;;  %v434_v3 = vmov (!%p138_p2), 0.0|0.0   ;;  %vm435_vm0 = vmmov (!%p138_p2), 0   ;;  %v436_v6 = vmov (!%p138_p2), 0.0  }
   0x6   : > { %141 = sbr.rel (%p138_p2) target bundleno = 244 (0xf4), region = 32  ;;  %404 = vmatprep.subr.bf16.mxu1 (!%p138_p2), %v434_v3  ;;  %v393_v4 = vpack.c.bf16 (!%p138_p2), %v175_v1, %v174_v0  ;;  %392 = vmatprep.subr.bf16.mxu0 (!%p138_p2), %v434_v3  ;;  %v177_v5 = vld [vmem:[%s517_s1 + $0x18] sm:$0xff] (!%p138_p2)  ;;  %p161_p3 = scmp.lt.s32.totalorder (!%p138_p2), %s340_s13, 1  ;;  %v178_v8 = vld [vmem:[%s517_s1 + $0x20] sm:$0xff] (!%p138_p2)  ;;  %v179_v9 = vld [vmem:[%s517_s1 + $0x28] sm:$0xff] (!%p138_p2)  ;;  %vm196_vm1 = vcmask (!%p138_p2), 1041408  }
   0x7   : > { %386 = vmatprep.mubr.msk.f32.mxu1 (!%p138_p2), %vm435_vm0, %v436_v6  ;;  %383 = vmatprep.mubr.msk.f32.mxu0 (!%p138_p2), %vm435_vm0, %v436_v6  ;;  %v396_v7 = vpack.c.bf16 (!%p138_p2), %v177_v5, %v176_v2  ;;  %v399_v10 = vpack.c.bf16 (!%p138_p2), %v179_v9, %v178_v8  ;;  %v180_v11 = vld [vmem:[%s517_s1 + $0x30] sm:$0xff] (!%p138_p2)  ;;  %v181_v12 = vld [vmem:[%s517_s1 + $0x38] sm:$0xff] (!%p138_p2)  ;;  %v182_v14 = vld [vmem:[%s517_s1 + $0x40] sm:$0x3] (!%p138_p2)  ;;  %vm186_vm2 = vcmask (!%p138_p2), 539648   ;;  %vm280_vm3 = vcmask (!%p138_p2), 261120  }
   0x8   : > { %409 = vmatpush3.bf16.msra.mxu1 (!%p138_p2), %v393_v4  ;;  %394 = vmatpush3.bf16.msra.mxu0 (!%p138_p2), %v393_v4  ;;  %v402_v13 = vpack.c.bf16 (!%p138_p2), %v181_v12, %v180_v11  ;;  %v184_v18 = vld [vmem:[%s518_s2 + $0x8] sm:$0xff] (!%p138_p2)  ;;  %v183_v19 = vld [vmem:[%s518_s2] sm:$0xff] (!%p138_p2)  ;;  %v185_v26 = vld [vmem:[%s518_s2 + $0x10] sm:$0x1] (!%p138_p2)  ;;  %vm283_vm4 = vcmask (!%p138_p2), 253952  }
   0x9   : > { %405 = vmatprep.subr.bf16.mxu1 (!%p138_p2), %v434_v3  ;;  %395 = vmatprep.subr.bf16.mxu0 (!%p138_p2), %v434_v3 }
   0xc   : > { %410 = vmatpush3.bf16.msra.mxu1 (!%p138_p2), %v396_v7  ;;  %397 = vmatpush3.bf16.msra.mxu0 (!%p138_p2), %v396_v7 }
   0xd   : > { %s521_s13 = smov (!%p161_p3, %s340_s13), 1  ;;  %406 = vmatprep.subr.bf16.mxu1 %v434_v3  ;;  %398 = vmatprep.subr.bf16.mxu0 %v434_v3 }
   0xe   : > { %s414_s30 = smul.u32 24, %s521_s13 }
  0x10   : > { %411 = vmatpush3.bf16.msra.mxu1 %v399_v10  ;;  %400 = vmatpush3.bf16.msra.mxu0 %v399_v10  ;;  %s165_s6 = scalar_lea.vmem %s516_s0, %s414_s30  ;;  %s170_s16 = scalar_lea.vmem %s519_s3, %s414_s30 }
  0x11   : > { %407 = vmatprep.subr.bf16.mxu1 %v434_v3  ;;  %401 = vmatprep.subr.bf16.mxu0 %v434_v3  ;;  %v172_v15 = vld [vmem:[%s165_s6 + $0x8] sm:$0xff]  ;;  %v171_v16 = vld [vmem:[%s165_s6] sm:$0xff]  ;;  %v173_v17 = vld [vmem:[%s165_s6 + $0x10] sm:$0x1] }
  0x14   : > { %412 = vmatpush3.bf16.msra.mxu1 %v402_v13  ;;  %403 = vmatpush3.bf16.msra.mxu0 %v402_v13 }
  0x15   : > { %408 = vmatprep.subr.mxu1 %v436_v6  ;;  %381 = vmatprep.subr.mxu0 %v436_v6 }
  0x18   : > { %413 = vmatpush3.msk.msra.mxu1 %vm196_vm1, %v182_v14  ;;  %382 = vmatpush3.msk.msra.mxu0 %vm196_vm1, %v182_v14 }
  0x19   : > { %387 = vmatmul.mubr.msk.f32.vlgmr.msra.gmra.mrb[0].mxu1 %vm186_vm2, %v172_v15  ;;  %384 = vmatmul.mubr.msk.f32.vlgmr.msra.gmra.mrb[0].mxu0 %vm186_vm2, %v171_v16 }
  0x1a   : > { %389 = vmatprep.mubr.msk.f32.mxu1 %vm435_vm0, %v436_v6 }
  0x1d   : > { %390 = vmatmul.mubr.msk.f32.gmra.mrb[2].mxu1 %vm186_vm2, %v173_v17 }
  0xec   : > { %v271_v20 = vpop.f32.mrb[0].mxu1  ;;  %v266_v21 = vpop.f32.mrb[0].mxu0 }
  0xed   : > { %v272_v22 = vadd.f32 %v271_v20, %v184_v18  ;;  %v388_v23 = vpop.f32.mrb[1].mxu1  ;;  %v267_v24 = vadd.f32 %v266_v21, %v183_v19  ;;  %v385_v25 = vpop.f32.mrb[1].mxu0 }
  0xef   : > { %282 = vst.msk [vmem:[%s170_s16 + $0x8] sm:$0xff] %vm280_vm3, %v272_v22  ;;  %281 = vst.msk [vmem:[%s170_s16] sm:$0xff] %vm280_vm3, %v267_v24 }
  0xf0   : > { %v276_v27 = vpop.f32.mrb[2].mxu1 }
  0xf1   : > { %v277_v28 = vadd.f32 %v276_v27, %v185_v26  ;;  %v391_v29 = vpop.f32.mrb[3].mxu1 }
  0xf3   : > { %284 = vst.msk [vmem:[%s170_s16 + $0x10] sm:$0x1] %vm283_vm4, %v277_v28 }
  0xf4 PF: > { %s13_s12 = sadd.s32 1, %s432_s12  }
  0xf5   : > { %p10_p4 = scmp.ge.s32.totalorder %s13_s12, 4  }
  0xf7   :  { %12 = sbr.rel (!%p10_p4) target bundleno = 1 (0x1), region = 62 }

</bundles_post_ra>
